<compile_context>
chip_gen: v6e
topology: v6e:2x2x1
jax: 0.10.0
libtpu: 0.0.40
codegen_flags: <defaults>
</compile_context>

<pallas_src>
import functools

import jax
import jax.numpy as jnp
from jax.experimental import pallas as pl
from jax.experimental.pallas import tpu as pltpu


# 48 MiB scoped VMEM: > v5e default (16 MiB) and v6e default (32 MiB), < v7x physical (64 MiB).
_VMEM_LIMIT = 48 * 1024 * 1024


# ----------------------------- tiling helpers ------------------------------------------
def _pick_tile(dim, target, multiple):
    """Largest tile <= target that divides `dim` and is a multiple of `multiple`;
    falls back to the full dim (always legal: block == array extent).
    TODO(synk): for large non-factorable dims this falls back to a whole-array block; a padding
    path would be needed there."""
    if dim <= target:
        return dim
    t = (target // multiple) * multiple
    while t >= multiple:
        if dim % t == 0:
            return t
        t -= multiple
    return dim


def _cparams(dimension_semantics):
    return pltpu.CompilerParams(dimension_semantics=dimension_semantics,
                                vmem_limit_bytes=_VMEM_LIMIT)


# ----------------------------- tiled dense (matmul + bias + optional activation) -------
def _dense_kernel(x_ref, w_ref, b_ref, o_ref, acc_ref, *, activation):
    k = pl.program_id(2)

    @pl.when(k == 0)
    def _():
        acc_ref[...] = jnp.zeros_like(acc_ref)

    acc_ref[...] += jnp.dot(x_ref[...], w_ref[...], preferred_element_type=jnp.float32)

    @pl.when(k == pl.num_programs(2) - 1)
    def _():
        y = acc_ref[...] + b_ref[...]
        if activation == "gelu":
            y = jax.nn.gelu(y)          # tanh-approx GELU (EUP)
        elif activation == "relu":
            y = jnp.maximum(y, 0.0)
        o_ref[...] = y.astype(o_ref.dtype)


def dense(x, w, b, activation=None, out_dtype=jnp.bfloat16):
    M, K = x.shape
    _, N = w.shape
    # 512 tiles ~= 85% of HBM roofline (vs ~63% at 256); tm 16-granular for bf16 packed sublanes.
    tm = _pick_tile(M, 512, 16)
    tn = _pick_tile(N, 512, 128)
    tk = _pick_tile(K, 512, 128)
    grid = (M // tm, N // tn, K // tk)
    return pl.pallas_call(
        functools.partial(_dense_kernel, activation=activation),
        out_shape=jax.ShapeDtypeStruct((M, N), out_dtype),
        grid=grid,
        in_specs=[
            pl.BlockSpec((tm, tk), lambda i, j, k: (i, k)),
            pl.BlockSpec((tk, tn), lambda i, j, k: (k, j)),
            pl.BlockSpec((1, tn), lambda i, j, k: (0, j)),
        ],
        out_specs=pl.BlockSpec((tm, tn), lambda i, j, k: (i, j)),
        scratch_shapes=[pltpu.VMEM((tm, tn), jnp.float32)],
        compiler_params=_cparams(("parallel", "parallel", "arbitrary")),
    )(x, w, b.reshape(1, N))


# ----------------------------- layernorm math ------------------------------------------
def _ln_math(h, g, b):
    mean = jnp.mean(h, axis=-1, keepdims=True)
    var = jnp.mean(jnp.square(h - mean), axis=-1, keepdims=True)
    inv = jax.lax.rsqrt(var + 1e-12)
    return (h - mean) * inv * g + b


# ----------------------------- row-tiled layernorm (embeddings) ------------------------
def _layernorm_kernel(x_ref, g_ref, b_ref, o_ref):
    h = x_ref[...].astype(jnp.float32)
    o_ref[...] = _ln_math(h, g_ref[...], b_ref[...]).astype(o_ref.dtype)


def layernorm(x, gamma, beta, out_dtype=jnp.bfloat16):
    M, H = x.shape
    tm = _pick_tile(M, 512, 16)
    grid = (M // tm,)
    return pl.pallas_call(
        _layernorm_kernel,
        out_shape=jax.ShapeDtypeStruct((M, H), out_dtype),
        grid=grid,
        in_specs=[
            pl.BlockSpec((tm, H), lambda i: (i, 0)),
            pl.BlockSpec((1, H), lambda i: (0, 0)),
            pl.BlockSpec((1, H), lambda i: (0, 0)),
        ],
        out_specs=pl.BlockSpec((tm, H), lambda i: (i, 0)),
        compiler_params=_cparams(("parallel",)),
    )(x, gamma.reshape(1, H), beta.reshape(1, H))


# ----------------------------- fused dense + residual + layernorm ----------------------
def _dense_res_ln_kernel(x_ref, w_ref, b_ref, r_ref, g_ref, bt_ref, o_ref, acc_ref):
    k = pl.program_id(1)

    @pl.when(k == 0)
    def _():
        acc_ref[...] = jnp.zeros_like(acc_ref)

    acc_ref[...] += jnp.dot(x_ref[...], w_ref[...], preferred_element_type=jnp.float32)

    @pl.when(k == pl.num_programs(1) - 1)
    def _():
        h = acc_ref[...] + b_ref[...] + r_ref[...].astype(jnp.float32)
        o_ref[...] = _ln_math(h, g_ref[...], bt_ref[...]).astype(o_ref.dtype)


def dense_residual_layernorm(x, w, b, residual, gamma, beta, out_dtype=jnp.bfloat16):
    M, K = x.shape
    _, N = w.shape                     # N == hidden; kept whole on lanes (LN reduces over it)
    tm = _pick_tile(M, 512, 16)
    tk = _pick_tile(K, 512, 128)
    grid = (M // tm, K // tk)
    return pl.pallas_call(
        _dense_res_ln_kernel,
        out_shape=jax.ShapeDtypeStruct((M, N), out_dtype),
        grid=grid,
        in_specs=[
            pl.BlockSpec((tm, tk), lambda i, k: (i, k)),
            pl.BlockSpec((tk, N), lambda i, k: (k, 0)),
            pl.BlockSpec((1, N), lambda i, k: (0, 0)),
            pl.BlockSpec((tm, N), lambda i, k: (i, 0)),
            pl.BlockSpec((1, N), lambda i, k: (0, 0)),
            pl.BlockSpec((1, N), lambda i, k: (0, 0)),
        ],
        out_specs=pl.BlockSpec((tm, N), lambda i, k: (i, 0)),
        scratch_shapes=[pltpu.VMEM((tm, N), jnp.float32)],
        compiler_params=_cparams(("parallel", "arbitrary")),
    )(x, w, b.reshape(1, N), residual, gamma.reshape(1, N), beta.reshape(1, N))


# ----------------------------- self-attention, grid over batch, heads in-kernel --------
def _attention_kernel(qkv_ref, bias_ref, o_ref, *, nh, dh, scale):
    qkv = qkv_ref[0]                                    # (S, 3H) bf16, fused Q|K|V
    H = nh * dh
    bias = bias_ref[0]                                  # (1, S) f32 additive mask

    ctxs = []
    for h in range(nh):                                 # unrolled head loop (no XLA transposes)
        q = qkv[:, h * dh:(h + 1) * dh] * scale         # pre-scale q (bf16, saves S^2 muls)
        k = qkv[:, H + h * dh:H + (h + 1) * dh]
        v = qkv[:, 2 * H + h * dh:2 * H + (h + 1) * dh]
        # q @ k^T without an explicit transpose (contract last dims on both sides).
        s = jax.lax.dot_general(q, k, (((1,), (1,)), ((), ())),
                                preferred_element_type=jnp.float32)
        s = s + bias                                    # (S,S) + (1,S)
        m = jnp.max(s, axis=-1, keepdims=True)
        p = jnp.exp(s - m)
        denom = jnp.sum(p, axis=-1, keepdims=True)
        p = p * pl.reciprocal(denom, approx=True)       # divide on the EUP slot
        ctxs.append(jnp.dot(p.astype(v.dtype), v, preferred_element_type=jnp.float32))

    # lane-dense store: all heads concatenated -> (S, H) in one unmasked write.
    o_ref[0] = jnp.concatenate(ctxs, axis=-1).astype(o_ref.dtype)


def attention(qkv, mask_bias, nh, dh, out_dtype=jnp.bfloat16):
    B, S, H3 = qkv.shape
    H = H3 // 3
    return pl.pallas_call(
        functools.partial(_attention_kernel, nh=nh, dh=dh, scale=1.0 / (dh ** 0.5)),
        out_shape=jax.ShapeDtypeStruct((B, S, H), out_dtype),
        grid=(B,),
        in_specs=[
            pl.BlockSpec((1, S, H3), lambda b: (b, 0, 0)),
            pl.BlockSpec((1, 1, S), lambda b: (b, 0, 0)),
        ],
        out_specs=pl.BlockSpec((1, S, H), lambda b: (b, 0, 0)),
        compiler_params=_cparams(("parallel",)),
    )(qkv, mask_bias)


# ----------------------------- TextCNN head (conv + relu + max-over-time + fc) ---------
def _textcnn_kernel(x_ref, *refs, filter_sizes):
    o_ref = refs[-1]
    params = refs[:-1]
    xb = x_ref[0]                                       # (S, H) bf16 for this batch element
    S = xb.shape[0]
    row = jax.lax.broadcasted_iota(jnp.int32, (S, 1), 0)

    feats = []
    for idx, ksz in enumerate(filter_sizes):
        w = params[2 * idx][...]                        # (ksz, H, F) bf16
        cb = params[2 * idx + 1][...]                   # (1, F) f32
        L = S - ksz + 1
        acc = jnp.zeros((S, w.shape[-1]), jnp.float32)
        for i in range(ksz):                            # conv taps via sublane roll (XLU), no
            xs = xb if i == 0 else pltpu.roll(xb, S - i, axis=0)   # misaligned slices
            acc = acc + jnp.dot(xs, w[i], preferred_element_type=jnp.float32)
        acc = jnp.maximum(acc + cb, 0.0)                # relu(conv + bias), (S, F)
        # rows >= L wrapped around; relu output is >= 0 so masking them to 0 keeps the max exact.
        acc = jnp.where(row < L, acc, 0.0)
        feats.append(jnp.max(acc, axis=0, keepdims=True))       # max over time -> (1, F)

    cat = jnp.concatenate(feats, axis=-1)               # (1, len(filter_sizes)*F)
    wfc = params[-2][...]                               # (nf*F, C) bf16
    bfc = params[-1][...]                               # (1, C) f32
    logits = jnp.dot(cat.astype(wfc.dtype), wfc,
                     preferred_element_type=jnp.float32) + bfc
    o_ref[0] = logits.astype(o_ref.dtype)


def textcnn(x, cnn_params, cfg):
    # TODO(synk): at large batch, fold (batch, time) into one M dim (im2col matmul) instead of a
    # batch grid; at this size a "parallel" batch grid (B>=2 keeps both v7x TCs busy) suffices.
    B, S, H = x.shape
    fsizes = tuple(cfg["fsizes"])
    F = cfg["nfilters"]
    C = cnn_params["fc_w"].shape[1]

    inputs = [x]
    in_specs = [pl.BlockSpec((1, S, H), lambda b: (b, 0, 0))]
    for k in fsizes:
        w = cnn_params["conv_w_%d" % k]
        inputs.append(w)
        in_specs.append(pl.BlockSpec(w.shape, lambda b: (0, 0, 0)))
        inputs.append(cnn_params["conv_b_%d" % k].reshape(1, F))
        in_specs.append(pl.BlockSpec((1, F), lambda b: (0, 0)))
    inputs.append(cnn_params["fc_w"])
    in_specs.append(pl.BlockSpec(cnn_params["fc_w"].shape, lambda b: (0, 0)))
    inputs.append(cnn_params["fc_b"].reshape(1, C))
    in_specs.append(pl.BlockSpec((1, C), lambda b: (0, 0)))

    out = pl.pallas_call(
        functools.partial(_textcnn_kernel, filter_sizes=fsizes),
        out_shape=jax.ShapeDtypeStruct((B, 1, C), jnp.float32),
        grid=(B,),
        in_specs=in_specs,
        out_specs=pl.BlockSpec((1, 1, C), lambda b: (b, 0, 0)),
        compiler_params=_cparams(("parallel",)),
    )(*inputs)
    return out.reshape(B, C)


# ----------------------------- full forward pass ---------------------------------------
def bert_textcnn_forward(params, input_ids, attention_mask, cfg):
    B, S = input_ids.shape
    H = cfg["hidden"]
    NH = cfg["heads"]
    DH = H // NH

    # embeddings: gather is plain-JAX glue; layernorm is a Pallas kernel (bf16 in/out, f32 math)
    emb = (
        params["word_emb"][input_ids]
        + params["pos_emb"][:S][None, :, :]
        + params["type_emb"][0][None, None, :]
    )
    x = layernorm(emb.reshape(B * S, H).astype(jnp.bfloat16),
                  params["emb_ln_g"], params["emb_ln_b"])          # (B*S, H) bf16

    # attention mask -> additive bias, one row per batch element
    bias = ((1.0 - attention_mask.astype(jnp.float32)) * -10000.0).reshape(B, 1, S)

    for layer in params["layers"]:
        # --- fused QKV projection (pre-concatenated [wq|wk|wv] weight from init) ---
        qkv = dense(x, layer["w_qkv"], layer["b_qkv"])              # (B*S, 3H) bf16
        # head split/merge happens entirely inside the attention kernel; reshapes below are free.
        ctx = attention(qkv.reshape(B, S, 3 * H), bias, NH, DH)     # (B, S, H) bf16
        # --- attention output projection fused with residual add + LN1 ---
        x = dense_residual_layernorm(ctx.reshape(B * S, H), layer["wo"], layer["bo"], x,
                                     layer["ln1_g"], layer["ln1_b"])
        # --- feed-forward: up-proj + GELU, then down-proj fused with residual + LN2 ---
        h = dense(x, layer["w1"], layer["b1"], activation="gelu")
        x = dense_residual_layernorm(h, layer["w2"], layer["b2"], x,
                                     layer["ln2_g"], layer["ln2_b"])

    last_hidden_state = x.reshape(B, S, H)
    return textcnn(last_hidden_state, params["cnn"], cfg)


# ----------------------------- deterministic parameter init ----------------------------
def init_params(key, cfg):
    H, I = cfg["hidden"], cfg["inter"]
    F, fsizes, C = cfg["nfilters"], cfg["fsizes"], cfg["nclasses"]
    keys = iter(jax.random.split(key, 256))
    bf = jnp.bfloat16

    def nrm(shape, dtype=jnp.float32, scale=0.02):
        return (scale * jax.random.normal(next(keys), shape)).astype(dtype)

    zeros = lambda shape: jnp.zeros(shape, jnp.float32)
    ones = lambda shape: jnp.ones(shape, jnp.float32)

    params = {
        "word_emb": nrm((cfg["vocab"], H)),
        "pos_emb": nrm((cfg["max_pos"], H)),
        "type_emb": nrm((2, H)),
        "emb_ln_g": ones((H,)),
        "emb_ln_b": zeros((H,)),
        "layers": [],
    }
    for _ in range(cfg["layers"]):
        params["layers"].append(
            dict(
                # QKV weights stored pre-fused: (H, 3H) == [wq | wk | wv]
                w_qkv=nrm((H, 3 * H), bf), b_qkv=zeros((3 * H,)),
                wo=nrm((H, H), bf), bo=zeros((H,)),
                ln1_g=ones((H,)), ln1_b=zeros((H,)),
                w1=nrm((H, I), bf), b1=zeros((I,)),
                w2=nrm((I, H), bf), b2=zeros((H,)),
                ln2_g=ones((H,)), ln2_b=zeros((H,)),
            )
        )
    cnn = {"fc_w": nrm((F * len(fsizes), C), bf), "fc_b": zeros((C,))}
    for k in fsizes:
        cnn["conv_w_%d" % k] = nrm((k, H, F), bf)   # PyTorch (F,1,k,H) stored as (k,H,F)
        cnn["conv_b_%d" % k] = zeros((F,))
    params["cnn"] = cnn
    return params


if __name__ == "__main__":
    cfg = dict(
        vocab=50,
        hidden=32,
        layers=2,
        heads=2,
        inter=64,
        max_pos=32,
        nfilters=8,
        fsizes=(2, 3, 4),
        nclasses=5,
    )
    B, S = 2, 16

    params = init_params(jax.random.PRNGKey(0), cfg)

    key_ids, _ = jax.random.split(jax.random.PRNGKey(0))
    input_ids = jax.random.randint(key_ids, (B, S), 0, cfg["vocab"], dtype=jnp.int32)
    attention_mask = jnp.ones((B, S), jnp.float32).at[1, 12:].set(0.0)

    out = bert_textcnn_forward(params, input_ids, attention_mask, cfg)
    out = jax.block_until_ready(out)
    assert out.shape == (B, cfg["nclasses"]) and out.dtype == jnp.float32
    print("KERNEL_OK")
</pallas_src>

<mosaic_0001>
module attributes {stable_mosaic.version = 11 : i64} {
  func.func @_layernorm_kernel(%arg0: i32, %arg1: memref<32x32xbf16, #tpu.memory_space<vmem>>, %arg2: memref<1x32xf32, #tpu.memory_space<vmem>>, %arg3: memref<1x32xf32, #tpu.memory_space<vmem>>, %arg4: memref<32x32xbf16, #tpu.memory_space<vmem>>) attributes {dimension_semantics = [#tpu.dimension_semantics<parallel>], iteration_bounds = array<i64: 1>, scalar_prefetch = 0 : i64, scratch_operands = 0 : i64, tpu.core_type = #tpu.core_type<tc>, window_params = [{transform_indices = @transform_0, window_bounds = array<i64: 32, 32>}, {pipeline_mode = #tpu.pipeline_mode<synchronous>, transform_indices = @transform_1, window_bounds = array<i64: 1, 32>}, {pipeline_mode = #tpu.pipeline_mode<synchronous>, transform_indices = @transform_2, window_bounds = array<i64: 1, 32>}, {transform_indices = @transform_3, window_bounds = array<i64: 32, 32>}]} {
    %c0 = arith.constant 0 : index
    %c0_0 = arith.constant 0 : index
    %0 = vector.load %arg1[%c0, %c0_0] : memref<32x32xbf16, #tpu.memory_space<vmem>>, vector<32x32xbf16>
    %1 = arith.extf %0 : vector<32x32xbf16> to vector<32x32xf32>
    %c0_1 = arith.constant 0 : index
    %c0_2 = arith.constant 0 : index
    %2 = vector.load %arg2[%c0_1, %c0_2] : memref<1x32xf32, #tpu.memory_space<vmem>>, vector<1x32xf32>
    %c0_3 = arith.constant 0 : index
    %c0_4 = arith.constant 0 : index
    %3 = vector.load %arg3[%c0_3, %c0_4] : memref<1x32xf32, #tpu.memory_space<vmem>>, vector<1x32xf32>
    %cst = arith.constant dense<0.000000e+00> : vector<32xf32>
    %4 = vector.multi_reduction <add>, %1, %cst [1] : vector<32x32xf32> to vector<32xf32>
    %5 = vector.shape_cast %4 : vector<32xf32> to vector<32x1xf32>
    %cst_5 = arith.constant 3.200000e+01 : f32
    %6 = vector.broadcast %cst_5 : f32 to vector<32x1xf32>
    %7 = arith.divf %5, %6 : vector<32x1xf32>
    %8 = vector.broadcast %7 : vector<32x1xf32> to vector<32x32xf32>
    %9 = arith.subf %1, %8 : vector<32x32xf32>
    %10 = arith.mulf %9, %9 : vector<32x32xf32>
    %cst_6 = arith.constant dense<0.000000e+00> : vector<32xf32>
    %11 = vector.multi_reduction <add>, %10, %cst_6 [1] : vector<32x32xf32> to vector<32xf32>
    %12 = vector.shape_cast %11 : vector<32xf32> to vector<32x1xf32>
    %cst_7 = arith.constant 3.200000e+01 : f32
    %13 = vector.broadcast %cst_7 : f32 to vector<32x1xf32>
    %14 = arith.divf %12, %13 : vector<32x1xf32>
    %cst_8 = arith.constant 9.99999996E-13 : f32
    %15 = vector.broadcast %cst_8 : f32 to vector<32x1xf32>
    %16 = arith.addf %14, %15 : vector<32x1xf32>
    %17 = math.rsqrt %16 : vector<32x1xf32>
    %18 = vector.broadcast %7 : vector<32x1xf32> to vector<32x32xf32>
    %19 = arith.subf %1, %18 : vector<32x32xf32>
    %20 = vector.broadcast %17 : vector<32x1xf32> to vector<32x32xf32>
    %21 = arith.mulf %19, %20 : vector<32x32xf32>
    %22 = vector.broadcast %2 : vector<1x32xf32> to vector<32x32xf32>
    %23 = arith.mulf %21, %22 : vector<32x32xf32>
    %24 = vector.broadcast %3 : vector<1x32xf32> to vector<32x32xf32>
    %25 = arith.addf %23, %24 : vector<32x32xf32>
    %26 = arith.truncf %25 : vector<32x32xf32> to vector<32x32xbf16>
    %c0_9 = arith.constant 0 : index
    %c0_10 = arith.constant 0 : index
    %27 = vector.load %arg4[%c0_9, %c0_10] : memref<32x32xbf16, #tpu.memory_space<vmem>>, vector<32x32xbf16>
    tpu.vector_store %arg4[%c0_9, %c0_10], %26 {strides = array<i32>} : memref<32x32xbf16, #tpu.memory_space<vmem>>, vector<32x32xbf16>,
    return
  }
  func.func @transform_0(%arg0: i32) -> (i32, i32) {
    %c0_i32 = arith.constant 0 : i32
    %c0_i32_0 = arith.constant 0 : i32
    return %arg0, %c0_i32 : i32, i32
  }
  func.func @transform_1(%arg0: i32) -> (i32, i32) {
    %c0_i32 = arith.constant 0 : i32
    %c0_i32_0 = arith.constant 0 : i32
    %c0_i32_1 = arith.constant 0 : i32
    return %c0_i32, %c0_i32_0 : i32, i32
  }
  func.func @transform_2(%arg0: i32) -> (i32, i32) {
    %c0_i32 = arith.constant 0 : i32
    %c0_i32_0 = arith.constant 0 : i32
    %c0_i32_1 = arith.constant 0 : i32
    return %c0_i32, %c0_i32_0 : i32, i32
  }
  func.func @transform_3(%arg0: i32) -> (i32, i32) {
    %c0_i32 = arith.constant 0 : i32
    %c0_i32_0 = arith.constant 0 : i32
    return %arg0, %c0_i32 : i32, i32
  }
}

</mosaic_0001>

<bundles_post_ra>
// kernel: tpu_custom_call.1
= control target key start
LH: loop header
LB: loop body
LE: loop exit
PB: predicated region body
PF: predicated region fallthrough
CT: control target
= control target key end

     0   :  { %8 = vsyncpa [#allocation3], 0  ;;  %s280_s0 = inlined_call_operand.hbm [shape: bf16[32,32], index: 0, kind: input, shape index: {}]   ;;  %s281_s1 = inlined_call_operand.vmem [shape: f32[1,32], index: 1, kind: input, shape index: {}]   ;;  %s282_s2 = inlined_call_operand.vmem [shape: f32[1,32], index: 2, kind: input, shape index: {}]   ;;  %s283_s3 = inlined_call_operand.hbm [shape: bf16[32,32], index: 3, kind: output, shape index: {}]  }
   0x1   :  { %9 = vsyncpa [#allocation4], 0  ;;  %s226_s12 = smov [#allocation2]  }
   0x2   :  { %s15_s13 = sshll.u32 %s226_s12, 4  ;;  %s16_s13 = int_to_ptr.vmem [resolvable:$true] %s15_s13 }
   0x3   :  { %s190_s14 = scalar_lea.vmem %s16_s13, 256  ;;  %p195_p1 = scmp.lt.s32.totalorder %s16_s13, %s16_s13 }
   0x4   :  { %p191_p0 = scmp.ne.s32.totalorder %s16_s13, %s190_s14  ;;  %p196_p2 = scmp.lt.s32.totalorder %s190_s14, %s190_s14 }
   0x6   :  { %p197_p3 = por %p196_p2, %p195_p1 }
   0x8   :  { %p198_p4 = pnand %p197_p3, %p191_p0 }
   0xa   :  { %201 = shalt.err (!%p198_p4)
}
   0xb   :  { %s227_s15 = smov 64   ;;  %s228_s16 = smov 4  }
   0xc   :  { %21 = dma.hbm_to_vmem [thread:$0]  %s280_s0, 256, %s16_s13, [#allocation3], %s227_s15, %s227_s15, %s228_s16  }
   0xd   :  { %222 = dma.done.wait [#allocation3], 256  }
   0xe   :  { %223 = vsyncadd [#allocation3], 4294967040  ;;  %v162_v0 = vld [vmem:[#allocation2] sm:$0xff]   ;;  %vm39_vm0 = vcmask 261120   ;;  %v169_v1 = vld [vmem:[#allocation2 + $0x8] sm:$0xff]   ;;  %vm129_vm1 = vcmask 257024  }
   0xf   :  { %v163_v2 = vunpack.c.l.bf16 %v162_v0  ;;  %v167_v3 = vunpack.c.l.bf16 %v169_v1  ;;  %v164_v4 = vunpack.c.h.bf16 %v162_v0  ;;  %v168_v5 = vunpack.c.h.bf16 %v169_v1  ;;  %v151_v43 = vld [vmem:[%s281_s1] ss:$0 sm:$0xff]  ;;  %s229_s1 = smov [#allocation5]  }
  0x10   :  { %v152_v45 = vld [vmem:[%s282_s2] ss:$0 sm:$0xff]  ;;  %s139_s2 = sshll.u32 %s229_s1, 4  ;;  %s140_s2 = int_to_ptr.vmem [resolvable:$true] %s139_s2 }
  0x11   :  { %v40_v6 = vsel %vm39_vm0, %v163_v2, 0.0  ;;  %v46_v7 = vsel %vm39_vm0, %v167_v3, 0.0  ;;  %v43_v8 = vsel %vm39_vm0, %v164_v4, 0.0  ;;  %v49_v9 = vsel %vm39_vm0, %v168_v5, 0.0  ;;  %s202_s22 = scalar_lea.vmem %s140_s2, 256  ;;  %p207_p6 = scmp.lt.s32.totalorder %s140_s2, %s140_s2 }
  0x12   :  { %41 = vadd.xlane.f32.xlu0 %v40_v6  ;;  %47 = vadd.xlane.f32.xlu1 %v46_v7  ;;  %p203_p5 = scmp.ne.s32.totalorder %s140_s2, %s202_s22  ;;  %p208_p7 = scmp.lt.s32.totalorder %s202_s22, %s202_s22 }
  0x14   :  { %p209_p8 = por %p208_p7, %p207_p6 }
  0x16   :  { %44 = vadd.xlane.f32.xlu0 %v43_v8  ;;  %50 = vadd.xlane.f32.xlu1 %v49_v9  ;;  %p210_p9 = pnand %p209_p8, %p203_p5 }
  0x9b   :  { %v42_v10 = vpop.xlane.xlu0 %41  ;;  %v48_v11 = vpop.xlane.xlu1 %47 }
  0x9c   :  { %v53_v12 = vmul.f32 0.03125, %v42_v10  ;;  %v55_v13 = vmul.f32 0.03125, %v48_v11 }
  0x9e   :  { %v57_v14 = vsub.f32 %v163_v2, %v53_v12  ;;  %v59_v15 = vsub.f32 %v167_v3, %v55_v13 }
  0x9f   :  { %v45_v16 = vpop.xlane.xlu0 %44  ;;  %v51_v17 = vpop.xlane.xlu1 %50 }
  0xa0   :  { %v54_v18 = vmul.f32 0.03125, %v45_v16  ;;  %v56_v19 = vmul.f32 0.03125, %v51_v17  ;;  %v61_v20 = vmul.f32 %v57_v14, %v57_v14  ;;  %v63_v21 = vmul.f32 %v59_v15, %v59_v15 }
  0xa2   :  { %v58_v22 = vsub.f32 %v164_v4, %v54_v18  ;;  %v60_v23 = vsub.f32 %v168_v5, %v56_v19  ;;  %v65_v24 = vsel %vm39_vm0, %v61_v20, 0.0  ;;  %v71_v25 = vsel %vm39_vm0, %v63_v21, 0.0 }
  0xa3   :  { %66 = vadd.xlane.f32.xlu0 %v65_v24 }
  0xa4   :  { %v62_v26 = vmul.f32 %v58_v22, %v58_v22  ;;  %v64_v27 = vmul.f32 %v60_v23, %v60_v23 }
  0xa6   :  { %v68_v28 = vsel %vm39_vm0, %v62_v26, 0.0  ;;  %v74_v29 = vsel %vm39_vm0, %v64_v27, 0.0 }
  0xa7   :  { %72 = vadd.xlane.f32.xlu0 %v71_v25  ;;  %69 = vadd.xlane.f32.xlu1 %v68_v28 }
  0xab   :  { %75 = vadd.xlane.f32.xlu1 %v74_v29 }
 0x12c   :  { %v67_v30 = vpop.xlane.xlu0 %66 }
 0x12d   :  { %v77_v31 = vmul.f32 0.03125, %v67_v30 }
 0x12f   :  { %v81_v32 = vadd.f32 1e-12, %v77_v31 }
 0x130   :  { %v70_v33 = vpop.xlane.xlu1 %69  ;;  %v73_v34 = vpop.xlane.xlu0 %72 }
 0x131   :  { %174 = vrsqrt.f32 %v81_v32  ;;  %v78_v35 = vmul.f32 0.03125, %v70_v33  ;;  %v79_v36 = vmul.f32 0.03125, %v73_v34 }
 0x133   :  { %v82_v37 = vadd.f32 1e-12, %v78_v35  ;;  %v83_v38 = vadd.f32 1e-12, %v79_v36 }
 0x134   :  { %v76_v39 = vpop.xlane.xlu1 %75 }
 0x135   :  { %176 = vrsqrt.f32 %v82_v37  ;;  %v80_v40 = vmul.f32 0.03125, %v76_v39 }
 0x136   :  { %178 = vrsqrt.f32 %v83_v38 }
 0x137   :  { %v84_v41 = vadd.f32 1e-12, %v80_v40 }
 0x139   :  { %180 = vrsqrt.f32 %v84_v41 }
 0x13e   :  { %v175_v42 = vpop.eup %174 }
 0x13f   :  { %v89_v44 = vmul.f32 %v175_v42, %v57_v14 }
 0x141   :  { %v99_v46 = vmul.f32 %v151_v43, %v89_v44 }
 0x142   :  { %v177_v47 = vpop.eup %176 }
 0x143   :  { %v179_v48 = vpop.eup %178  ;;  %v90_v49 = vmul.f32 %v177_v47, %v58_v22  ;;  %v109_v50 = vadd.f32 %v152_v45, %v99_v46 }
 0x144   :  { %v91_v51 = vmul.f32 %v179_v48, %v59_v15 }
 0x145   :  { %v100_v52 = vmul.f32 %v151_v43, %v90_v49  ;;  %v157_v53 = vpack.c.bf16 %v109_v50, %v109_v50 }
 0x146   :  { %v181_v54 = vpop.eup %180  ;;  %v101_v55 = vmul.f32 %v151_v43, %v91_v51 }
 0x147   :  { %v92_v56 = vmul.f32 %v181_v54, %v60_v23  ;;  %v110_v57 = vadd.f32 %v152_v45, %v100_v52  ;;  %130 = vst.msk [vmem:[#allocation5] sm:$0xf] %vm129_vm1, %v157_v53 }
 0x148   :  { %v111_v58 = vadd.f32 %v152_v45, %v101_v55 }
 0x149   :  { %v102_v59 = vmul.f32 %v151_v43, %v92_v56  ;;  %v158_v60 = vpack.c.bf16 %v110_v57, %v110_v57 }
 0x14a   :  { %v159_v61 = vpack.c.bf16 %v111_v58, %v111_v58 }
 0x14b   :  { %v112_v62 = vadd.f32 %v152_v45, %v102_v59  ;;  %131 = vst.msk [vmem:[#allocation5 + $0x4] sm:$0xf] %vm129_vm1, %v158_v60 }
 0x14c   :  { %132 = vst.msk [vmem:[#allocation5 + $0x8] sm:$0xf] %vm129_vm1, %v159_v61 }
 0x14d   :  { %v160_v63 = vpack.c.bf16 %v112_v62, %v112_v62 }
 0x14f   :  { %133 = vst.msk [vmem:[#allocation5 + $0xc] sm:$0xf] %vm129_vm1, %v160_v63 }
 0x150   :  { %213 = shalt.err (!%p210_p9)
}
 0x151   :  { %145 = dma.vmem_to_hbm [thread:$0]  %s140_s2, 256, %s283_s3, [#allocation4], %s227_s15, %s227_s15, %s228_s16  }
 0x152   :  { %224 = dma.done.wait [#allocation4], 256  }
 0x153   :  { %225 = vsyncadd [#allocation4], 4294967040 }
 0x154   :  { %149 = vsyncpa [#allocation3], 1 }
 0x155   :  { %150 = vsyncpa [#allocation4], 1 }

</bundles_post_ra>
